<compile_context>
chip_gen: v7x
topology: tpu7x:2x2x1
jax: 0.10.0
libtpu: 0.0.40
codegen_flags: <defaults>
</compile_context>

<pallas_src>
import functools

import jax
import jax.numpy as jnp
from jax import lax
from jax.experimental import pallas as pl
from jax.experimental.pallas import tpu as pltpu


def _round_up(x, m):
    return -(-x // m) * m


def _cbf_mlp_kernel(x_ref, w1_ref, b1_ref, w2_ref, b2_ref, w3_ref, b3_ref,
                    o_ref, *, matmul_dtype):
    """One batch tile of the CBF MLP; writes a lane-dense (1, Bt) output row."""
    # Layer 1: (Bt, latent) @ (latent, h) on the MXU, f32 accumulation.
    # x ideally already bf16 in HBM (caller contract) -> the cast is a no-op.
    x = x_ref[...].astype(matmul_dtype)
    w1 = w1_ref[...].astype(matmul_dtype)
    h1 = jnp.dot(x, w1, preferred_element_type=jnp.float32)
    h1 = jnp.maximum(h1 + b1_ref[...], 0.0)            # bias + ReLU in f32

    # Layer 2: (Bt, h) @ (h, h).
    w2 = w2_ref[...].astype(matmul_dtype)
    h2 = jnp.dot(h1.astype(matmul_dtype), w2, preferred_element_type=jnp.float32)
    h2 = jnp.maximum(h2 + b2_ref[...], 0.0)

    # Layer 3 (h -> 1): contract the *last* dims of (1, h) and (Bt, h) so the
    # result lands lane-dense as (1, Bt); kept in f32 (tiny).
    y = lax.dot_general(w3_ref[...], h2,
                        dimension_numbers=(((1,), (1,)), ((), ())),
                        preferred_element_type=jnp.float32)      # (1, Bt)
    o_ref[...] = jnp.tanh(y + b3_ref[...]).astype(o_ref.dtype)


def sablas_barrier_forward(x, params, *, block_batch=None,
                           matmul_dtype=jnp.bfloat16):
    """Apply the SABLASBarrier CBF MLP with a Pallas kernel.

    x:      [B, latent_dim]  (bf16 preferred; f32 accepted)
    params: dict with w1 [latent_dim, h], b1 [1, h],
                      w2 [h, h],          b2 [1, h],
                      w3 [h, 1],          b3 [1, 1]
    matmul_dtype: jnp.bfloat16 (fast) or jnp.float32 (tighter parity).
    returns [B, 1] float32
    """
    B, latent_dim = x.shape
    h_dim = params["w1"].shape[1]

    # ---- batch-tile selection --------------------------------------------
    #  * multiples of 128 rows so the lane-dense output stores are unmasked
    #  * >= 2 grid steps once B >= 256 (v7x megacore sharding)
    #  * cap at 2048 rows (sweepable via block_batch); ~2 MiB VMEM live.
    if block_batch is None:
        if B < 256:
            block_batch = _round_up(B, 128)
        else:
            block_batch = min(2048, _round_up(pl.cdiv(B, 2), 128))
    else:
        block_batch = _round_up(max(int(block_batch), 1), 128)
    grid = pl.cdiv(B, block_batch)
    # No jnp.pad of x: the ragged last block is handled by Pallas (clipped
    # input DMA, discarded out-of-bounds output lanes); rows are independent.

    # w3 is stored [h, 1]; present it as a (1, h) row for the lane-dense
    # layer-3 contraction (reshape == transpose for a single column).
    w3_row = params["w3"].reshape(1, h_dim)

    # Grid-invariant weights/biases (constant index_map -> DMA'd once).
    full = lambda shape: pl.BlockSpec(shape, lambda i: (0, 0))

    grid_spec = pltpu.PrefetchScalarGridSpec(
        num_scalar_prefetch=0,
        grid=(grid,),
        in_specs=[
            pl.BlockSpec((block_batch, latent_dim), lambda i: (i, 0)),  # x tile
            full((latent_dim, h_dim)),   # w1
            full((1, h_dim)),            # b1
            full((h_dim, h_dim)),        # w2
            full((1, h_dim)),            # b2
            full((1, h_dim)),            # w3 (row layout)
            full((1, 1)),                # b3
        ],
        out_specs=pl.BlockSpec((1, block_batch), lambda i: (0, i)),
    )

    flops = 2 * B * (latent_dim * h_dim + h_dim * h_dim + h_dim)
    param_bytes = sum(int(p.size) * p.dtype.itemsize
                      for p in (params["w1"], params["b1"], params["w2"],
                                params["b2"], w3_row, params["b3"]))
    bytes_accessed = (B * latent_dim * x.dtype.itemsize + param_bytes + B * 4)

    out = pl.pallas_call(
        functools.partial(_cbf_mlp_kernel, matmul_dtype=matmul_dtype),
        out_shape=jax.ShapeDtypeStruct((1, B), jnp.float32),
        grid_spec=grid_spec,
        compiler_params=pltpu.CompilerParams(
            dimension_semantics=("parallel",)),
        cost_estimate=pl.CostEstimate(flops=int(flops),
                                      transcendentals=int(B),
                                      bytes_accessed=int(bytes_accessed)),
    )(x, params["w1"], params["b1"], params["w2"], params["b2"],
      w3_row, params["b3"])

    # Back to the (B, 1) layout of the PyTorch module.
    return out.reshape(B, 1)


def init_params(key, latent_dim, h_dim):
    """Deterministic init matching torch.nn.Linear shapes (stored as [in,out])."""
    dims = [latent_dim, h_dim, h_dim, 1]
    ks = jax.random.split(key, 2 * (len(dims) - 1))
    params = {}
    for i, (din, dout) in enumerate(zip(dims[:-1], dims[1:])):
        bound = 1.0 / jnp.sqrt(float(din))  # torch default uniform(-1/sqrt(in), 1/sqrt(in))
        w = jax.random.uniform(ks[2 * i], (din, dout), jnp.float32,
                               minval=-bound, maxval=bound)
        b = jax.random.uniform(ks[2 * i + 1], (1, dout), jnp.float32,
                               minval=-bound, maxval=bound)
        params[f"w{i + 1}"] = w
        params[f"b{i + 1}"] = b
    return params


if __name__ == "__main__":
    latent_dim = 32
    h_dim = 64

    key = jax.random.PRNGKey(0)
    k_x, k_x2, k_p = jax.random.split(key, 3)
    params = init_params(k_p, latent_dim, h_dim)

    def ref_f32(xf):
        """Exact f32 semantics of the PyTorch forward."""
        h1 = jnp.maximum(
            jnp.dot(xf, params["w1"], precision="highest") + params["b1"], 0.0)
        h2 = jnp.maximum(
            jnp.dot(h1, params["w2"], precision="highest") + params["b2"], 0.0)
        return jnp.tanh(
            jnp.dot(h2, params["w3"], precision="highest") + params["b3"])

    # Case 1: small batch, bf16 caller contract (single 128-wide tile,
    # exercises the partial-block path since 16 < 128).
    batch = 16
    x = jax.random.normal(k_x, (batch, latent_dim),
                          dtype=jnp.float32).astype(jnp.bfloat16)
    out = jax.block_until_ready(sablas_barrier_forward(x, params))
    assert out.shape == (batch, 1)
    ref = ref_f32(x.astype(jnp.float32))
    assert jnp.allclose(out, ref, atol=7.5e-2, rtol=0.0), (
        "bf16 path vs f32 ref max diff", float(jnp.max(jnp.abs(out - ref))))

    # Case 2: non-tile-aligned batch -> 2 parallel grid steps, ragged last
    # block, no wrapper-side padding of x.
    batch2 = 600
    x2 = jax.random.normal(k_x2, (batch2, latent_dim),
                           dtype=jnp.float32).astype(jnp.bfloat16)
    out2 = jax.block_until_ready(sablas_barrier_forward(x2, params))
    assert out2.shape == (batch2, 1)
    ref2 = ref_f32(x2.astype(jnp.float32))
    assert jnp.allclose(out2, ref2, atol=7.5e-2, rtol=0.0), (
        "tiled bf16 path vs f32 ref max diff",
        float(jnp.max(jnp.abs(out2 - ref2))))

    # Case 3: f32-matmul path (no explicit bf16 quantization of activations)
    # for callers that need tighter parity with the f32 PyTorch forward.
    out3 = jax.block_until_ready(
        sablas_barrier_forward(x2.astype(jnp.float32), params,
                               matmul_dtype=jnp.float32))
    assert jnp.allclose(out3, ref2, atol=5e-2, rtol=0.0), (
        "f32 path vs f32 ref max diff", float(jnp.max(jnp.abs(out3 - ref2))))

    print("KERNEL_OK")
</pallas_src>

<mosaic_0001>
module attributes {stable_mosaic.version = 11 : i64} {
  func.func @_cbf_mlp_kernel(%arg0: i32, %arg1: memref<128x32xbf16, #tpu.memory_space<vmem>>, %arg2: memref<32x64xf32, #tpu.memory_space<vmem>>, %arg3: memref<1x64xf32, #tpu.memory_space<vmem>>, %arg4: memref<64x64xf32, #tpu.memory_space<vmem>>, %arg5: memref<1x64xf32, #tpu.memory_space<vmem>>, %arg6: memref<1x64xf32, #tpu.memory_space<vmem>>, %arg7: memref<1x1xf32, #tpu.memory_space<vmem>>, %arg8: memref<1x128xf32, #tpu.memory_space<vmem>>) attributes {dimension_semantics = [#tpu.dimension_semantics<parallel>], iteration_bounds = array<i64: 1>, scalar_prefetch = 0 : i64, scratch_operands = 0 : i64, tpu.core_type = #tpu.core_type<tc>, window_params = [{transform_indices = @transform_0, window_bounds = array<i64: 128, 32>}, {pipeline_mode = #tpu.pipeline_mode<synchronous>, transform_indices = @transform_1, window_bounds = array<i64: 32, 64>}, {pipeline_mode = #tpu.pipeline_mode<synchronous>, transform_indices = @transform_2, window_bounds = array<i64: 1, 64>}, {pipeline_mode = #tpu.pipeline_mode<synchronous>, transform_indices = @transform_3, window_bounds = array<i64: 64, 64>}, {pipeline_mode = #tpu.pipeline_mode<synchronous>, transform_indices = @transform_4, window_bounds = array<i64: 1, 64>}, {pipeline_mode = #tpu.pipeline_mode<synchronous>, transform_indices = @transform_5, window_bounds = array<i64: 1, 64>}, {pipeline_mode = #tpu.pipeline_mode<synchronous>, transform_indices = @transform_6, window_bounds = array<i64: 1, 1>}, {transform_indices = @transform_7, window_bounds = array<i64: 1, 128>}]} {
    %c0 = arith.constant 0 : index
    %c0_0 = arith.constant 0 : index
    %0 = vector.load %arg1[%c0, %c0_0] : memref<128x32xbf16, #tpu.memory_space<vmem>>, vector<128x32xbf16>
    %c0_1 = arith.constant 0 : index
    %c0_2 = arith.constant 0 : index
    %1 = vector.load %arg2[%c0_1, %c0_2] : memref<32x64xf32, #tpu.memory_space<vmem>>, vector<32x64xf32>
    %2 = arith.truncf %1 : vector<32x64xf32> to vector<32x64xbf16>
    %cst = arith.constant dense<0.000000e+00> : vector<128x64xf32>
    %3 = tpu.matmul %0, %2, %cst {dimension_numbers = #tpu.dot_dimension_numbers<[1], [0], [0], [1], [0, 0, 1, 1], [], []>} : vector<128x32xbf16>, vector<32x64xbf16>, vector<128x64xf32> -> vector<128x64xf32>
    %c0_3 = arith.constant 0 : index
    %c0_4 = arith.constant 0 : index
    %4 = vector.load %arg3[%c0_3, %c0_4] : memref<1x64xf32, #tpu.memory_space<vmem>>, vector<1x64xf32>
    %5 = vector.broadcast %4 : vector<1x64xf32> to vector<128x64xf32>
    %6 = arith.addf %3, %5 : vector<128x64xf32>
    %cst_5 = arith.constant 0.000000e+00 : f32
    %7 = vector.broadcast %cst_5 : f32 to vector<128x64xf32>
    %8 = arith.maximumf %6, %7 : vector<128x64xf32>
    %c0_6 = arith.constant 0 : index
    %c0_7 = arith.constant 0 : index
    %9 = vector.load %arg4[%c0_6, %c0_7] : memref<64x64xf32, #tpu.memory_space<vmem>>, vector<64x64xf32>
    %10 = arith.truncf %9 : vector<64x64xf32> to vector<64x64xbf16>
    %11 = arith.truncf %8 : vector<128x64xf32> to vector<128x64xbf16>
    %cst_8 = arith.constant dense<0.000000e+00> : vector<128x64xf32>
    %12 = tpu.matmul %11, %10, %cst_8 {dimension_numbers = #tpu.dot_dimension_numbers<[1], [0], [0], [1], [0, 0, 1, 1], [], []>} : vector<128x64xbf16>, vector<64x64xbf16>, vector<128x64xf32> -> vector<128x64xf32>
    %c0_9 = arith.constant 0 : index
    %c0_10 = arith.constant 0 : index
    %13 = vector.load %arg5[%c0_9, %c0_10] : memref<1x64xf32, #tpu.memory_space<vmem>>, vector<1x64xf32>
    %14 = vector.broadcast %13 : vector<1x64xf32> to vector<128x64xf32>
    %15 = arith.addf %12, %14 : vector<128x64xf32>
    %cst_11 = arith.constant 0.000000e+00 : f32
    %16 = vector.broadcast %cst_11 : f32 to vector<128x64xf32>
    %17 = arith.maximumf %15, %16 : vector<128x64xf32>
    %c0_12 = arith.constant 0 : index
    %c0_13 = arith.constant 0 : index
    %18 = vector.load %arg6[%c0_12, %c0_13] : memref<1x64xf32, #tpu.memory_space<vmem>>, vector<1x64xf32>
    %cst_14 = arith.constant dense<0.000000e+00> : vector<1x128xf32>
    %19 = tpu.matmul %18, %17, %cst_14 {dimension_numbers = #tpu.dot_dimension_numbers<[1], [1], [0], [0], [0, 0, 1, 0], [], []>} : vector<1x64xf32>, vector<128x64xf32>, vector<1x128xf32> -> vector<1x128xf32>
    %c0_15 = arith.constant 0 : index
    %c0_16 = arith.constant 0 : index
    %20 = vector.load %arg7[%c0_15, %c0_16] : memref<1x1xf32, #tpu.memory_space<vmem>>, vector<1x1xf32>
    %21 = vector.broadcast %20 : vector<1x1xf32> to vector<1x128xf32>
    %22 = arith.addf %19, %21 : vector<1x128xf32>
    %23 = math.tanh %22 : vector<1x128xf32>
    %c0_17 = arith.constant 0 : index
    %c0_18 = arith.constant 0 : index
    %24 = vector.load %arg8[%c0_17, %c0_18] : memref<1x128xf32, #tpu.memory_space<vmem>>, vector<1x128xf32>
    tpu.vector_store %arg8[%c0_17, %c0_18], %23 {strides = array<i32>} : memref<1x128xf32, #tpu.memory_space<vmem>>, vector<1x128xf32>,
    return
  }
  func.func @transform_0(%arg0: i32) -> (i32, i32) {
    %c0_i32 = arith.constant 0 : i32
    %c0_i32_0 = arith.constant 0 : i32
    return %arg0, %c0_i32 : i32, i32
  }
  func.func @transform_1(%arg0: i32) -> (i32, i32) {
    %c0_i32 = arith.constant 0 : i32
    %c0_i32_0 = arith.constant 0 : i32
    %c0_i32_1 = arith.constant 0 : i32
    return %c0_i32, %c0_i32_0 : i32, i32
  }
  func.func @transform_2(%arg0: i32) -> (i32, i32) {
    %c0_i32 = arith.constant 0 : i32
    %c0_i32_0 = arith.constant 0 : i32
    %c0_i32_1 = arith.constant 0 : i32
    return %c0_i32, %c0_i32_0 : i32, i32
  }
  func.func @transform_3(%arg0: i32) -> (i32, i32) {
    %c0_i32 = arith.constant 0 : i32
    %c0_i32_0 = arith.constant 0 : i32
    %c0_i32_1 = arith.constant 0 : i32
    return %c0_i32, %c0_i32_0 : i32, i32
  }
  func.func @transform_4(%arg0: i32) -> (i32, i32) {
    %c0_i32 = arith.constant 0 : i32
    %c0_i32_0 = arith.constant 0 : i32
    %c0_i32_1 = arith.constant 0 : i32
    return %c0_i32, %c0_i32_0 : i32, i32
  }
  func.func @transform_5(%arg0: i32) -> (i32, i32) {
    %c0_i32 = arith.constant 0 : i32
    %c0_i32_0 = arith.constant 0 : i32
    %c0_i32_1 = arith.constant 0 : i32
    return %c0_i32, %c0_i32_0 : i32, i32
  }
  func.func @transform_6(%arg0: i32) -> (i32, i32) {
    %c0_i32 = arith.constant 0 : i32
    %c0_i32_0 = arith.constant 0 : i32
    %c0_i32_1 = arith.constant 0 : i32
    return %c0_i32, %c0_i32_0 : i32, i32
  }
  func.func @transform_7(%arg0: i32) -> (i32, i32) {
    %c0_i32 = arith.constant 0 : i32
    %c0_i32_0 = arith.constant 0 : i32
    return %c0_i32, %arg0 : i32, i32
  }
}

</mosaic_0001>

<bundles_post_ra>
// kernel: tpu_custom_call.1
= control target key start
LH: loop header
LB: loop body
LE: loop exit
PB: predicated region body
PF: predicated region fallthrough
CT: control target
= control target key end

     0   :  { %s1068_s0 = inlined_call_operand.hbm [shape: bf16[16,32], index: 0, kind: input, shape index: {}]   ;;  %s1069_s1 = inlined_call_operand.hbm [shape: f32[32,64], index: 1, kind: input, shape index: {}]   ;;  %s1070_s2 = inlined_call_operand.vmem [shape: f32[1,64], index: 2, kind: input, shape index: {}]   ;;  %s1071_s3 = inlined_call_operand.hbm [shape: f32[64,64], index: 3, kind: input, shape index: {}]   ;;  %s1072_s4 = inlined_call_operand.vmem [shape: f32[1,64], index: 4, kind: input, shape index: {}]   ;;  %s1073_s5 = inlined_call_operand.vmem [shape: f32[1,64], index: 5, kind: input, shape index: {}]   ;;  %s1074_s6 = inlined_call_operand.<no memory space> [shape: f32[1,1], index: 6, kind: input, shape index: {}]   ;;  %s1075_s7 = inlined_call_operand.hbm [shape: f32[1,16], index: 7, kind: output, shape index: {}]  }
   0x1   :  { %v12_v0 = vstv %s1074_s6 }
   0x2   :  { %13 = vst [vmem:[#allocation2] sm:$0x1] %v12_v0 }
   0x3   :  { %14 = vsyncpa [#allocation4], 0 }
   0x4   :  { %15 = vsyncpa [#allocation7], 0 }
   0x5   :  { %16 = vsyncpa [#allocation5], 0 }
   0x6   :  { %21 = vsyncadd [#allocation4], 896  ;;  %s903_s26 = smov [#allocation6]   ;;  %s809_s30 = scalar_lea.hbm %s1069_s1, 512 }
   0x7   :  { %s34_s27 = sshll.u32 %s903_s26, 4  ;;  %p810_p0 = scmp.ne.s32.totalorder %s1069_s1, %s809_s30  ;;  %s35_s27 = int_to_ptr.vmem [resolvable:$true] %s34_s27 }
   0x8   :  { %p813_p1 = scmp.lt.u32.totalorder %s809_s30, %s1069_s1 }
   0xa   :  { %p815_p2 = pnand %p813_p1, %p810_p0 }
   0xc   :  { %818 = shalt.err (!%p815_p2)
}
   0xd   :  { %s819_s6 = scalar_lea.vmem %s35_s27, 512  ;;  %p824_p4 = scmp.lt.s32.totalorder %s35_s27, %s35_s27 }
   0xe   :  { %p820_p3 = scmp.ne.s32.totalorder %s35_s27, %s819_s6  ;;  %p825_p5 = scmp.lt.s32.totalorder %s819_s6, %s819_s6 }
  0x10   :  { %p826_p6 = por %p825_p5, %p824_p4 }
  0x12   :  { %p827_p7 = pnand %p826_p6, %p820_p3 }
  0x14   :  { %830 = shalt.err (!%p827_p7)
}
  0x15   :  { %s904_s12 = smov 128   ;;  %s905_s13 = smov 8  }
  0x16   :  { %40 = dma.hbm_to_vmem [thread:$0]  %s1069_s1, 512, %s35_s27, [#allocation7], %s904_s12, %s904_s12, %s905_s13  }
  0x17   :  { %s906_s16 = smov [#allocation3]   ;;  %s831_s20 = scalar_lea.hbm %s1068_s0, 128 }
  0x18   :  { %s22_s17 = sshll.u32 %s906_s16, 4  ;;  %p832_p8 = scmp.ne.s32.totalorder %s1068_s0, %s831_s20  ;;  %s23_s17 = int_to_ptr.vmem [resolvable:$true] %s22_s17 }
  0x19   :  { %p835_p9 = scmp.lt.u32.totalorder %s831_s20, %s1068_s0 }
  0x1b   :  { %p837_p10 = pnand %p835_p9, %p832_p8 }
  0x1d   :  { %840 = shalt.err (!%p837_p10)
}
  0x1e   :  { %s841_s25 = scalar_lea.vmem %s23_s17, 128  ;;  %s845_s1 = scalar_lea.vmem %s23_s17, 1024 }
  0x1f   :  { %p842_p11 = scmp.ne.s32.totalorder %s23_s17, %s841_s25  ;;  %p846_p12 = scmp.lt.s32.totalorder %s23_s17, %s23_s17 }
  0x20   :  { %p847_p13 = scmp.lt.s32.totalorder %s845_s1, %s841_s25 }
  0x22   :  { %p848_p0 = por %p847_p13, %p846_p12 }
  0x24   :  { %p849_p1 = pnand %p848_p0, %p842_p11 }
  0x26   :  { %852 = shalt.err (!%p849_p1)
}
  0x27   :  { %s907_s26 = smov 64   ;;  %s908_s27 = smov 4  }
  0x28   :  { %28 = dma.hbm_to_vmem [thread:$0]  %s1068_s0, 128, %s23_s17, [#allocation4], %s907_s26, %s907_s26, %s908_s27  }
  0x29   :  { %s909_s30 = smov [#allocation8]   ;;  %s853_s11 = scalar_lea.hbm %s1071_s3, 1024 }
  0x2a   :  { %s48_s8 = sshll.u32 %s909_s30, 4  ;;  %p854_p2 = scmp.ne.s32.totalorder %s1071_s3, %s853_s11  ;;  %s49_s8 = int_to_ptr.vmem [resolvable:$true] %s48_s8 }
  0x2b   :  { %p857_p3 = scmp.lt.u32.totalorder %s853_s11, %s1071_s3 }
  0x2d   :  { %p859_p4 = pnand %p857_p3, %p854_p2 }
  0x2f   :  { %862 = shalt.err (!%p859_p4)
}
  0x30   :  { %s863_s18 = scalar_lea.vmem %s49_s8, 1024  ;;  %p868_p6 = scmp.lt.s32.totalorder %s49_s8, %s49_s8 }
  0x31   :  { %p864_p5 = scmp.ne.s32.totalorder %s49_s8, %s863_s18  ;;  %p869_p7 = scmp.lt.s32.totalorder %s863_s18, %s863_s18 }
  0x33   :  { %p870_p8 = por %p869_p7, %p868_p6 }
  0x35   :  { %p871_p9 = pnand %p870_p8, %p864_p5 }
  0x37   :  { %874 = shalt.err (!%p871_p9)
}
  0x38   :  { %54 = dma.hbm_to_vmem [thread:$0]  %s1071_s3, 1024, %s49_s8, [#allocation7], %s904_s12, %s904_s12, %s905_s13  }
  0x39   :  { %897 = dma.done.wait [#allocation4], 1024  }
  0x3a   :  { %898 = vsyncadd [#allocation4], 4294966272 }
  0x3b   :  { %899 = dma.done.wait [#allocation7], 1536  }
  0x3c   :  { %900 = vsyncadd [#allocation7], 4294965760  ;;  %v87_v1 = vld [vmem:[#allocation6] sm:$0xff]  ;;  %v88_v2 = vld [vmem:[#allocation6 + $0x8] sm:$0xff]  ;;  %vm140_vm0 = vcmask 261120   ;;  %vm305_vm1 = vcmask 523264  }
  0x3d   :  { %v89_v3 = vld [vmem:[#allocation6 + $0x10] sm:$0xff]  ;;  %v91_v4 = vpack.c.bf16 %v88_v2, %v87_v1  ;;  %v90_v5 = vld [vmem:[#allocation6 + $0x18] sm:$0xff]  ;;  %v799_v7 = vld [vmem:[#allocation3] sm:$0xff]   ;;  %vm911_vm2 = vmmov 0   ;;  %s914_s20 = smov [#allocation9]  }
  0x3e   :  { %v92_v6 = vpack.c.bf16 %v90_v5, %v89_v3  ;;  %679 = vmatprep.mubr.msk.bf16.mxu1 %vm140_vm0, %v799_v7  ;;  %v800_v8 = vld [vmem:[#allocation3 + $0x8] sm:$0xff]   ;;  %v801_v9 = vld [vmem:[#allocation3 + $0x10] sm:$0xff]   ;;  %v278_v10 = vld [vmem:[#allocation8] sm:$0xff]  ;;  %s583_s21 = sshll.u32 %s914_s20, 4  ;;  %s584_s21 = int_to_ptr.vmem [resolvable:$true] %s583_s21 }
  0x3f   :  { %675 = vmatprep.subr.bf16.mxu1 %v91_v4  ;;  %v279_v11 = vld [vmem:[#allocation8 + $0x8] sm:$0xff]  ;;  %v280_v13 = vld [vmem:[#allocation8 + $0x10] sm:$0xff]  ;;  %v281_v14 = vld [vmem:[#allocation8 + $0x18] sm:$0xff]  ;;  %s875_s22 = scalar_lea.vmem %s584_s21, 16  ;;  %s879_s23 = scalar_lea.vmem %s584_s21, 32 }
  0x40   :  { %676 = vmatpush3.bf16.msra.mxu1 %v91_v4  ;;  %v286_v12 = vpack.c.bf16 %v279_v11, %v278_v10  ;;  %v287_v15 = vpack.c.bf16 %v281_v14, %v280_v13  ;;  %v282_v16 = vld [vmem:[#allocation8 + $0x20] sm:$0xff]  ;;  %v283_v17 = vld [vmem:[#allocation8 + $0x28] sm:$0xff]  ;;  %v802_v19 = vld [vmem:[#allocation3 + $0x18] sm:$0xff]   ;;  %p876_p10 = scmp.ne.s32.totalorder %s584_s21, %s875_s22  ;;  %p880_p11 = scmp.lt.s32.totalorder %s584_s21, %s584_s21 }
  0x41   :  { %677 = vmatprep.subr.bf16.mxu1 %v92_v6  ;;  %v288_v18 = vpack.c.bf16 %v283_v17, %v282_v16  ;;  %v803_v20 = vld [vmem:[#allocation3 + $0x20] sm:$0xff]   ;;  %v804_v21 = vld [vmem:[#allocation3 + $0x28] sm:$0xff]   ;;  %v805_v22 = vld [vmem:[#allocation3 + $0x30] sm:$0xff]   ;;  %p881_p12 = scmp.lt.s32.totalorder %s879_s23, %s875_s22 }
  0x42   :  { %v806_v23 = vld [vmem:[#allocation3 + $0x38] sm:$0xff]   ;;  %v284_v24 = vld [vmem:[#allocation8 + $0x30] sm:$0xff]  ;;  %vm1025_vm3 = vmpackc.low %vm305_vm1, %vm305_vm1 }
  0x43   :  { %v285_v25 = vld [vmem:[#allocation8 + $0x38] sm:$0xff]  ;;  %p882_p13 = por %p881_p12, %p880_p11 }
  0x44   :  { %678 = vmatpush3.bf16.msra.mxu1 %v92_v6  ;;  %v289_v26 = vpack.c.bf16 %v285_v25, %v284_v24  ;;  %v593_v27 = vld [vmem:[%s1070_s2] ss:$0 sm:$0xff] }
  0x45   :  { %695 = vmatprep.subr.bf16.mxu1 %v286_v12  ;;  %v610_v24 = vld [vmem:[%s1072_s4] ss:$0 sm:$0xff]  ;;  %p883_p0 = pnand %p882_p13, %p876_p10 }
  0x47   :  { %680 = vmatmul.mubr.msk.bf16.vlgmr.msra.gmra.mrb[0].mxu1 %vm140_vm0, %v800_v8 }
  0x48   :  { %683 = vmatprep.mubr.msk.bf16.mxu1 %vm140_vm0, %v801_v9  ;;  %696 = vmatpush3.bf16.msra.mxu1 %v286_v12 }
  0x49   :  { %697 = vmatprep.subr.bf16.mxu1 %v287_v15 }
  0x4c   :  { %698 = vmatpush3.bf16.msra.mxu1 %v287_v15 }
  0x4d   :  { %699 = vmatprep.subr.bf16.mxu1 %v288_v18 }
  0x4f   :  { %684 = vmatmul.mubr.msk.bf16.gmra.mrb[4].mxu1 %vm140_vm0, %v802_v19 }
  0x50   :  { %687 = vmatprep.mubr.msk.bf16.mxu1 %vm140_vm0, %v803_v20  ;;  %700 = vmatpush3.bf16.msra.mxu1 %v288_v18  ;;  %v910_v20 = vmov 0.0|0.0  }
  0x51   :  { %701 = vmatprep.subr.bf16.mxu1 %v289_v26  ;;  %754 = vmatprep.subr.bf16.mxu0 %v910_v20 }
  0x54   :  { %702 = vmatpush3.bf16.msra.mxu1 %v289_v26 }
  0x57   :  { %688 = vmatmul.mubr.msk.bf16.gmra.mrb[8].mxu1 %vm140_vm0, %v804_v21  ;;  %v912_v21 = vmov 0.0  }
  0x58   :  { %691 = vmatprep.mubr.msk.bf16.mxu1 %vm140_vm0, %v805_v22  ;;  %751 = vmatprep.mubr.msk.f32.mxu0 %vm911_vm2, %v912_v21  ;;  %v444_v22 = vld [vmem:[#allocation2] sm:$0x1] }
  0x5f   :  { %692 = vmatmul.mubr.msk.bf16.gmra.mrb[12].mxu1 %vm140_vm0, %v806_v23  ;;  %v913_v23 = vmov 0  }
  0x60   :  { %798 = vset.pattern.permute.xlu0 %v913_v23 }
  0x61   :  { %447 = vperm.xlu0 %798, %v444_v22  }
  0xe0   :  { %v448_v23 = vpop.permute.xlu0 %447 }
 0x11a   :  { %v681_v28 = vpop.f32.mrb[0].mxu1 }
 0x11b   :  { %v208_v29 = vadd.f32 %v681_v28, %v593_v27  ;;  %v199_v30 = vpop.f32.mrb[1].mxu1 }
 0x11c   :  { %v200_v31 = vadd.f32 %v593_v27, %v199_v30  ;;  %v682_v32 = vpop.f32.mrb[2].mxu1 }
 0x11d   :  { %v211_v33 = vadd.f32 %v682_v32, %v593_v27  ;;  %v202_v34 = vpop.f32.mrb[3].mxu1  ;;  %v264_v36 = vmax.f32 %v208_v29, 0.0 }
 0x11e   :  { %v203_v35 = vadd.f32 %v593_v27, %v202_v34  ;;  %v262_v38 = vmax.f32 %v200_v31, 0.0 }
 0x11f   :  { %v265_v37 = vmax.f32 %v211_v33, 0.0 }
 0x120   :  { %v263_v39 = vmax.f32 %v203_v35, 0.0 }
 0x121   :  { %v291_v40 = vpack.c.bf16 %v265_v37, %v264_v36 }
 0x122   :  { %v290_v41 = vpack.c.bf16 %v263_v39, %v262_v38  ;;  %v685_v42 = vpop.f32.mrb[4].mxu1 }
 0x123   :  { %v224_v43 = vadd.f32 %v685_v42, %v593_v27  ;;  %v215_v44 = vpop.f32.mrb[5].mxu1 }
 0x124   :  { %v216_v45 = vadd.f32 %v593_v27, %v215_v44  ;;  %703 = vmatprep.mubr.msk.bf16.mxu1 %vm305_vm1, %v290_v41  ;;  %v686_v46 = vpop.f32.mrb[6].mxu1 }
 0x125   :  { %v268_v47 = vmax.f32 %v224_v43, 0.0  ;;  %v227_v48 = vadd.f32 %v686_v46, %v593_v27  ;;  %704 = vmatmul.mubr.msk.bf16.vlgmr.msra.gmra.mrb[16].mxu1 %vm305_vm1, %v291_v40  ;;  %v218_v49 = vpop.f32.mrb[7].mxu1 }
 0x126   :  { %v266_v50 = vmax.f32 %v216_v45, 0.0  ;;  %v219_v51 = vadd.f32 %v593_v27, %v218_v49 }
 0x127   :  { %v269_v52 = vmax.f32 %v227_v48, 0.0 }
 0x128   :  { %v267_v53 = vmax.f32 %v219_v51, 0.0 }
 0x129   :  { %v293_v54 = vpack.c.bf16 %v269_v52, %v268_v47 }
 0x12a   :  { %v292_v55 = vpack.c.bf16 %v267_v53, %v266_v50  ;;  %v689_v56 = vpop.f32.mrb[8].mxu1 }
 0x12b   :  { %v240_v57 = vadd.f32 %v689_v56, %v593_v27  ;;  %v231_v58 = vpop.f32.mrb[9].mxu1 }
 0x12c   :  { %707 = vmatprep.mubr.msk.bf16.mxu1 %vm305_vm1, %v292_v55  ;;  %v232_v59 = vadd.f32 %v593_v27, %v231_v58  ;;  %v690_v60 = vpop.f32.mrb[10].mxu1 }
 0x12d   :  { %708 = vmatmul.mubr.msk.bf16.gmra.mrb[20].mxu1 %vm305_vm1, %v293_v54  ;;  %v272_v61 = vmax.f32 %v240_v57, 0.0  ;;  %v243_v62 = vadd.f32 %v690_v60, %v593_v27  ;;  %v234_v63 = vpop.f32.mrb[11].mxu1 }
 0x12e   :  { %v270_v0 = vmax.f32 %v232_v59, 0.0  ;;  %v235_v1 = vadd.f32 %v593_v27, %v234_v63 }
 0x12f   :  { %v273_v2 = vmax.f32 %v243_v62, 0.0 }
 0x130   :  { %v271_v3 = vmax.f32 %v235_v1, 0.0 }
 0x131   :  { %v295_v4 = vpack.c.bf16 %v273_v2, %v272_v61 }
 0x132   :  { %v294_v5 = vpack.c.bf16 %v271_v3, %v270_v0  ;;  %v693_v6 = vpop.f32.mrb[12].mxu1 }
 0x133   :  { %v256_v7 = vadd.f32 %v693_v6, %v593_v27  ;;  %v247_v8 = vpop.f32.mrb[13].mxu1 }
 0x134   :  { %711 = vmatprep.mubr.msk.bf16.mxu1 %vm305_vm1, %v294_v5  ;;  %v248_v9 = vadd.f32 %v593_v27, %v247_v8  ;;  %v694_v10 = vpop.f32.mrb[14].mxu1 }
 0x135   :  { %712 = vmatmul.mubr.msk.bf16.gmra.mrb[24].mxu1 %vm305_vm1, %v295_v4  ;;  %v276_v11 = vmax.f32 %v256_v7, 0.0  ;;  %v259_v12 = vadd.f32 %v694_v10, %v593_v27  ;;  %v250_v13 = vpop.f32.mrb[15].mxu1 }
 0x136   :  { %v274_v14 = vmax.f32 %v248_v9, 0.0  ;;  %v251_v15 = vadd.f32 %v593_v27, %v250_v13 }
 0x137   :  { %v277_v16 = vmax.f32 %v259_v12, 0.0 }
 0x138   :  { %v275_v17 = vmax.f32 %v251_v15, 0.0 }
 0x139   :  { %v297_v18 = vpack.c.bf16 %v277_v16, %v276_v11 }
 0x13a   :  { %v296_v19 = vpack.c.bf16 %v275_v17, %v274_v14 }
 0x13c   :  { %715 = vmatprep.mubr.msk.bf16.mxu1 %vm305_vm1, %v296_v19  ;;  %v450_v19 = vlaneseq }
 0x13d   :  { %716 = vmatmul.mubr.msk.bf16.gmra.mrb[28].mxu1 %vm305_vm1, %v297_v18  ;;  %v443_v18 = vld [vmem:[%s1073_s5] sm:$0x1] }
 0x13e   :  { %v451_v21 = vshrl.u32 %v450_v19, 7 }
 0x140   :  { %v452_v22 = vsub.s32 0, %v451_v21 }
 0x1f8   :  { %v705_v25 = vpop.f32.mrb[16].mxu1 }
 0x1f9   :  { %v373_v26 = vadd.f32 %v705_v25, %v610_v24  ;;  %v364_v27 = vpop.f32.mrb[17].mxu1 }
 0x1fa   :  { %v365_v28 = vadd.f32 %v610_v24, %v364_v27  ;;  %v706_v29 = vpop.f32.mrb[18].mxu1 }
 0x1fb   :  { %v376_v30 = vadd.f32 %v706_v29, %v610_v24  ;;  %v367_v31 = vpop.f32.mrb[19].mxu1  ;;  %v429_v33 = vmax.f32 %v373_v26, 0.0 }
 0x1fc   :  { %v368_v32 = vadd.f32 %v610_v24, %v367_v31  ;;  %v427_v35 = vmax.f32 %v365_v28, 0.0 }
 0x1fd   :  { %v430_v34 = vmax.f32 %v376_v30, 0.0 }
 0x1fe   :  { %v428_v36 = vmax.f32 %v368_v32, 0.0 }
 0x1ff   :  { %v759_v37 = vpack.c.bf16 %v430_v34, %v429_v33 }
 0x200   :  { %v755_v39 = vpack.c.bf16 %v428_v36, %v427_v35  ;;  %v709_v40 = vpop.f32.mrb[20].mxu1 }
 0x201   :  { %v389_v41 = vadd.f32 %v709_v40, %v610_v24  ;;  %v380_v42 = vpop.f32.mrb[21].mxu1 }
 0x202   :  { %v381_v43 = vadd.f32 %v610_v24, %v380_v42  ;;  %757 = vmatpush3.bf16.xpose.msk.msra.mxu0 %vm1025_vm3, %v755_v39  ;;  %v710_v44 = vpop.f32.mrb[22].mxu1 }
 0x203   :  { %v433_v45 = vmax.f32 %v389_v41, 0.0  ;;  %v392_v46 = vadd.f32 %v710_v44, %v610_v24  ;;  %v383_v47 = vpop.f32.mrb[23].mxu1  ;;  %758 = vmatprep.subr.bf16.mxu0 %v910_v20 }
 0x204   :  { %v431_v48 = vmax.f32 %v381_v43, 0.0  ;;  %v384_v49 = vadd.f32 %v610_v24, %v383_v47 }
 0x205   :  { %v434_v50 = vmax.f32 %v392_v46, 0.0 }
 0x206   :  { %v432_v51 = vmax.f32 %v384_v49, 0.0 }
 0x207   :  { %v767_v52 = vpack.c.bf16 %v434_v50, %v433_v45 }
 0x208   :  { %v763_v53 = vpack.c.bf16 %v432_v51, %v431_v48  ;;  %v713_v54 = vpop.f32.mrb[24].mxu1 }
 0x209   :  { %v405_v55 = vadd.f32 %v713_v54, %v610_v24  ;;  %v396_v56 = vpop.f32.mrb[25].mxu1 }
 0x20a   :  { %761 = vmatpush3.bf16.xpose.msk.msra.mxu0 %vm1025_vm3, %v759_v37  ;;  %v397_v57 = vadd.f32 %v610_v24, %v396_v56  ;;  %v714_v58 = vpop.f32.mrb[26].mxu1 }
 0x20b   :  { %v437_v59 = vmax.f32 %v405_v55, 0.0  ;;  %762 = vmatprep.subr.bf16.mxu0 %v910_v20  ;;  %v408_v60 = vadd.f32 %v714_v58, %v610_v24  ;;  %v399_v61 = vpop.f32.mrb[27].mxu1 }
 0x20c   :  { %v435_v62 = vmax.f32 %v397_v57, 0.0  ;;  %v400_v63 = vadd.f32 %v610_v24, %v399_v61 }
 0x20d   :  { %v438_v0 = vmax.f32 %v408_v60, 0.0 }
 0x20e   :  { %v436_v1 = vmax.f32 %v400_v63, 0.0 }
 0x20f   :  { %v775_v2 = vpack.c.bf16 %v438_v0, %v437_v59 }
 0x210   :  { %v771_v3 = vpack.c.bf16 %v436_v1, %v435_v62  ;;  %v717_v4 = vpop.f32.mrb[28].mxu1 }
 0x211   :  { %v421_v5 = vadd.f32 %v717_v4, %v610_v24  ;;  %v412_v6 = vpop.f32.mrb[29].mxu1 }
 0x212   :  { %765 = vmatpush3.bf16.xpose.msk.msra.mxu0 %vm1025_vm3, %v763_v53  ;;  %v413_v7 = vadd.f32 %v610_v24, %v412_v6  ;;  %v718_v8 = vpop.f32.mrb[30].mxu1 }
 0x213   :  { %766 = vmatprep.subr.bf16.mxu0 %v910_v20  ;;  %v441_v9 = vmax.f32 %v421_v5, 0.0  ;;  %v424_v10 = vadd.f32 %v718_v8, %v610_v24  ;;  %v415_v11 = vpop.f32.mrb[31].mxu1 }
 0x214   :  { %v439_v12 = vmax.f32 %v413_v7, 0.0  ;;  %v416_v13 = vadd.f32 %v610_v24, %v415_v11  ;;  %v453_v24 = vrot.slane %v448_v23, %v452_v22 }
 0x215   :  { %v442_v14 = vmax.f32 %v424_v10, 0.0 }
 0x216   :  { %v440_v15 = vmax.f32 %v416_v13, 0.0 }
 0x217   :  { %v783_v16 = vpack.c.bf16 %v442_v14, %v441_v9 }
 0x218   :  { %v779_v17 = vpack.c.bf16 %v440_v15, %v439_v12 }
 0x21a   :  { %769 = vmatpush3.bf16.xpose.msk.msra.mxu0 %vm1025_vm3, %v767_v52 }
 0x21b   :  { %770 = vmatprep.subr.bf16.mxu0 %v910_v20 }
 0x222   :  { %773 = vmatpush3.bf16.xpose.msk.msra.mxu0 %vm1025_vm3, %v771_v3 }
 0x223   :  { %774 = vmatprep.subr.bf16.mxu0 %v910_v20 }
 0x22a   :  { %777 = vmatpush3.bf16.xpose.msk.msra.mxu0 %vm1025_vm3, %v775_v2 }
 0x22b   :  { %778 = vmatprep.subr.bf16.mxu0 %v910_v20 }
 0x232   :  { %781 = vmatpush3.bf16.xpose.msk.msra.mxu0 %vm1025_vm3, %v779_v17 }
 0x233   :  { %782 = vmatprep.subr.bf16.mxu0 %v910_v20 }
 0x23a   :  { %785 = vmatpush3.bf16.xpose.msk.msra.mxu0 %vm1025_vm3, %v783_v16 }
 0x241   :  { %752 = vmatmul.mubr.msk.f32.vlgmr.msra.gmra.mrb[0].mxu0 %vm305_vm1, %v443_v18 }
 0x314   :  { %v571_v25 = vpop.f32.mrb[0].mxu0 }
 0x315   :  { %v572_v26 = vadd.f32 %v571_v25, %v453_v24  ;;  %v753_v27 = vpop.f32.mrb[1].mxu0 }
 0x317   :  { %807 = vtanh.f32 %v572_v26 }
 0x321   :  { %v808_v20 = vpop.eup %807 }
 0x322   :  { %576 = vst [vmem:[#allocation9] sm:$0x1] %v808_v20 }
 0x323   :  { %886 = shalt.err (!%p883_p0)
}
 0x324   :  { %s887_s25 = scalar_lea.hbm %s1075_s7, 16 }
 0x325   :  { %p888_p1 = scmp.ne.s32.totalorder %s1075_s7, %s887_s25  ;;  %p891_p2 = scmp.lt.u32.totalorder %s887_s25, %s1075_s7 }
 0x327   :  { %p893_p3 = pnand %p891_p2, %p888_p1 }
 0x329   :  { %896 = shalt.err (!%p893_p3)
}
 0x32a   :  { %586 = dma.vmem_to_hbm [thread:$0]  %s584_s21, 16, %s1075_s7, [#allocation5]  }
 0x32b   :  { %901 = dma.done.wait [#allocation5], 16  }
 0x32c   :  { %902 = vsyncadd [#allocation5], 4294967280 }
 0x32d   :  { %590 = vsyncpa [#allocation4], 1 }
 0x32e   :  { %591 = vsyncpa [#allocation7], 1 }
 0x32f   :  { %592 = vsyncpa [#allocation5], 1 }

</bundles_post_ra>
